<compile_context>
chip_gen: v7x
topology: tpu7x:2x2x1
jax: 0.10.0
libtpu: 0.0.40
codegen_flags: <defaults>
</compile_context>

<pallas_src>
import functools

import jax
import jax.numpy as jnp
from jax import lax
from jax.experimental import pallas as pl
from jax.experimental.pallas import tpu as pltpu


def _round_up(x, m):
    return ((x + m - 1) // m) * m


def _pick_block_b(B, target):
    """Largest batch tile <= target that divides B (prefer multiples of 8)."""
    cap = max(1, min(target, B))
    for tb in range(cap, 0, -1):
        if B % tb == 0 and (tb % 8 == 0 or tb == B):
            return tb
    return B  # single full-batch tile (block == full array dim: always legal)


def _cls_head_kernel(x_ref, w1_ref, b1_ref, w2_ref, b2_ref, out_ref):
    # x_ref:  [TB, H]   CLS-token features for this batch tile (native dtype)
    # w1_ref: [H, H]    dense weight, PyTorch [out, in] layout
    # b1_ref: [1, H]    dense bias
    # w2_ref: [Lp, H]   out_proj weight, [out, in], label dim padded to 128
    # b2_ref: [1, Lp]   out_proj bias (padded)
    # out_ref:[TB, Lp]  logits (padded)
    x = x_ref[...]

    # dense: x @ W^T  (contract H of x with dim 1 of W -> no transpose copy;
    # the MXU handles this orientation natively, accumulating in f32).
    h = lax.dot_general(
        x, w1_ref[...],
        dimension_numbers=(((1,), (1,)), ((), ())),
        preferred_element_type=jnp.float32)
    h = jnp.tanh(h + b1_ref[...].astype(jnp.float32))

    # out_proj: h @ W_out^T  (feed the MXU in the storage dtype again).
    o = lax.dot_general(
        h.astype(x.dtype), w2_ref[...],
        dimension_numbers=(((1,), (1,)), ((), ())),
        preferred_element_type=jnp.float32)
    o = o + b2_ref[...].astype(jnp.float32)

    out_ref[...] = o.astype(out_ref.dtype)


@functools.partial(jax.jit, static_argnames=("block_b",))
def roberta_classification_head(features, w_dense, b_dense, w_out, b_out,
                                *, block_b=256):
    """features: [B, S, H]; weights in PyTorch layout; returns logits [B, L]."""
    B, S, H = features.shape
    L = w_out.shape[0]
    Lp = _round_up(max(L, 1), 128)          # lane-dense output slab
    TB = _pick_block_b(B, block_b)          # batch tile
    grid_b = B // TB

    # Fused CLS extraction: view features as [B, S*H]; the x BlockSpec reads
    # only the first H columns (== features[:, 0, :]) directly from HBM.
    feat2d = features.reshape(B, S * H)

    # Pad the label dim to a 128-lane multiple (zero rows -> zero logits,
    # sliced away after the call).  In a real model do this once at load time.
    if Lp != L:
        w2 = jnp.pad(w_out, ((0, Lp - L), (0, 0)))
        b2 = jnp.pad(b_out, (0, Lp - L))
    else:
        w2, b2 = w_out, b_out
    b1 = b_dense.reshape(1, H)
    b2 = b2.reshape(1, Lp)

    # TODO(synk): dropout is modeled in eval mode (identity); training-mode
    # dropout would need pltpu.prng_seed / pltpu.stateful_bernoulli masking.

    itm_x = features.dtype.itemsize
    itm_w = w_dense.dtype.itemsize
    cost = pl.CostEstimate(
        flops=2 * B * H * (H + Lp),
        transcendentals=B * H,                                    # tanh
        bytes_accessed=(B * H) * itm_x                            # CLS slab
        + (H * H + Lp * H + H + Lp) * itm_w                        # weights
        + B * Lp * itm_x,                                          # logits
    )

    out_padded = pl.pallas_call(
        _cls_head_kernel,
        out_shape=jax.ShapeDtypeStruct((B, Lp), features.dtype),
        grid_spec=pltpu.PrefetchScalarGridSpec(
            num_scalar_prefetch=0,
            grid=(grid_b,),
            in_specs=[
                pl.BlockSpec((TB, H), lambda i: (i, 0)),    # CLS columns only
                pl.BlockSpec((H, H), lambda i: (0, 0)),     # dense W (pinned)
                pl.BlockSpec((1, H), lambda i: (0, 0)),     # dense b
                pl.BlockSpec((Lp, H), lambda i: (0, 0)),    # out_proj W (pinned)
                pl.BlockSpec((1, Lp), lambda i: (0, 0)),    # out_proj b
            ],
            out_specs=pl.BlockSpec((TB, Lp), lambda i: (i, 0)),
        ),
        compiler_params=pltpu.CompilerParams(
            # batch tiles are independent -> shard across TCs on v7x
            dimension_semantics=("parallel",),
            # explicit budget: tile sizes above keep the resident footprint
            # far below 32 MiB scoped / 64 MiB physical (v7x)
            vmem_limit_bytes=32 * 1024 * 1024,
        ),
        cost_estimate=cost,
    )(feat2d, w_dense, b1, w2, b2)

    return out_padded[:, :L]


if __name__ == "__main__":
    # Small RoBERTa-like config: batch=16, seq=8, hidden=128, num_labels=3.
    B, S, H, L = 16, 8, 128, 3

    key = jax.random.PRNGKey(0)
    k_feat, k_w1, k_b1, k_w2, k_b2 = jax.random.split(key, 5)

    features = jax.random.normal(k_feat, (B, S, H), dtype=jnp.float32)
    # PyTorch nn.Linear layout: weight [out, in], bias [out].
    w_dense = jax.random.normal(k_w1, (H, H), dtype=jnp.float32) * 0.02
    b_dense = jax.random.normal(k_b1, (H,), dtype=jnp.float32) * 0.02
    w_out = jax.random.normal(k_w2, (L, H), dtype=jnp.float32) * 0.02
    b_out = jax.random.normal(k_b2, (L,), dtype=jnp.float32) * 0.02

    # block_b=8 -> grid=(2,): exercises the tiled / double-buffered path.
    logits = roberta_classification_head(
        features, w_dense, b_dense, w_out, b_out, block_b=8)
    logits = jax.block_until_ready(logits)

    # Pure-JAX reference check.
    x = features[:, 0, :]
    ref = jnp.tanh(x @ w_dense.T + b_dense) @ w_out.T + b_out
    assert logits.shape == (B, L)
    assert jnp.allclose(logits, ref, atol=1e-4, rtol=1e-4), "mismatch vs reference"

    print("KERNEL_OK")
</pallas_src>

<mosaic_0001>
module attributes {stable_mosaic.version = 11 : i64} {
  func.func @_cls_head_kernel(%arg0: i32, %arg1: memref<8x128xf32, #tpu.memory_space<vmem>>, %arg2: memref<128x128xf32, #tpu.memory_space<vmem>>, %arg3: memref<1x128xf32, #tpu.memory_space<vmem>>, %arg4: memref<128x128xf32, #tpu.memory_space<vmem>>, %arg5: memref<1x128xf32, #tpu.memory_space<vmem>>, %arg6: memref<8x128xf32, #tpu.memory_space<vmem>>) attributes {dimension_semantics = [#tpu.dimension_semantics<parallel>], iteration_bounds = array<i64: 2>, scalar_prefetch = 0 : i64, scratch_operands = 0 : i64, tpu.core_type = #tpu.core_type<tc>, window_params = [{transform_indices = @transform_0, window_bounds = array<i64: 8, 128>}, {pipeline_mode = #tpu.pipeline_mode<synchronous>, transform_indices = @transform_1, window_bounds = array<i64: 128, 128>}, {pipeline_mode = #tpu.pipeline_mode<synchronous>, transform_indices = @transform_2, window_bounds = array<i64: 1, 128>}, {pipeline_mode = #tpu.pipeline_mode<synchronous>, transform_indices = @transform_3, window_bounds = array<i64: 128, 128>}, {pipeline_mode = #tpu.pipeline_mode<synchronous>, transform_indices = @transform_4, window_bounds = array<i64: 1, 128>}, {transform_indices = @transform_5, window_bounds = array<i64: 8, 128>}]} {
    %c0 = arith.constant 0 : index
    %c0_0 = arith.constant 0 : index
    %0 = vector.load %arg1[%c0, %c0_0] : memref<8x128xf32, #tpu.memory_space<vmem>>, vector<8x128xf32>
    %c0_1 = arith.constant 0 : index
    %c0_2 = arith.constant 0 : index
    %1 = vector.load %arg2[%c0_1, %c0_2] : memref<128x128xf32, #tpu.memory_space<vmem>>, vector<128x128xf32>
    %cst = arith.constant dense<0.000000e+00> : vector<8x128xf32>
    %2 = tpu.matmul %0, %1, %cst {dimension_numbers = #tpu.dot_dimension_numbers<[1], [1], [0], [0], [0, 0, 1, 0], [], []>} : vector<8x128xf32>, vector<128x128xf32>, vector<8x128xf32> -> vector<8x128xf32>
    %c0_3 = arith.constant 0 : index
    %c0_4 = arith.constant 0 : index
    %3 = vector.load %arg3[%c0_3, %c0_4] : memref<1x128xf32, #tpu.memory_space<vmem>>, vector<1x128xf32>
    %4 = vector.broadcast %3 : vector<1x128xf32> to vector<8x128xf32>
    %5 = arith.addf %2, %4 : vector<8x128xf32>
    %6 = math.tanh %5 : vector<8x128xf32>
    %c0_5 = arith.constant 0 : index
    %c0_6 = arith.constant 0 : index
    %7 = vector.load %arg4[%c0_5, %c0_6] : memref<128x128xf32, #tpu.memory_space<vmem>>, vector<128x128xf32>
    %cst_7 = arith.constant dense<0.000000e+00> : vector<8x128xf32>
    %8 = tpu.matmul %6, %7, %cst_7 {dimension_numbers = #tpu.dot_dimension_numbers<[1], [1], [0], [0], [0, 0, 1, 0], [], []>} : vector<8x128xf32>, vector<128x128xf32>, vector<8x128xf32> -> vector<8x128xf32>
    %c0_8 = arith.constant 0 : index
    %c0_9 = arith.constant 0 : index
    %9 = vector.load %arg5[%c0_8, %c0_9] : memref<1x128xf32, #tpu.memory_space<vmem>>, vector<1x128xf32>
    %10 = vector.broadcast %9 : vector<1x128xf32> to vector<8x128xf32>
    %11 = arith.addf %8, %10 : vector<8x128xf32>
    %c0_10 = arith.constant 0 : index
    %c0_11 = arith.constant 0 : index
    %12 = vector.load %arg6[%c0_10, %c0_11] : memref<8x128xf32, #tpu.memory_space<vmem>>, vector<8x128xf32>
    tpu.vector_store %arg6[%c0_10, %c0_11], %11 {strides = array<i32>} : memref<8x128xf32, #tpu.memory_space<vmem>>, vector<8x128xf32>,
    return
  }
  func.func @transform_0(%arg0: i32) -> (i32, i32) {
    %c0_i32 = arith.constant 0 : i32
    %c0_i32_0 = arith.constant 0 : i32
    return %arg0, %c0_i32 : i32, i32
  }
  func.func @transform_1(%arg0: i32) -> (i32, i32) {
    %c0_i32 = arith.constant 0 : i32
    %c0_i32_0 = arith.constant 0 : i32
    %c0_i32_1 = arith.constant 0 : i32
    return %c0_i32, %c0_i32_0 : i32, i32
  }
  func.func @transform_2(%arg0: i32) -> (i32, i32) {
    %c0_i32 = arith.constant 0 : i32
    %c0_i32_0 = arith.constant 0 : i32
    %c0_i32_1 = arith.constant 0 : i32
    return %c0_i32, %c0_i32_0 : i32, i32
  }
  func.func @transform_3(%arg0: i32) -> (i32, i32) {
    %c0_i32 = arith.constant 0 : i32
    %c0_i32_0 = arith.constant 0 : i32
    %c0_i32_1 = arith.constant 0 : i32
    return %c0_i32, %c0_i32_0 : i32, i32
  }
  func.func @transform_4(%arg0: i32) -> (i32, i32) {
    %c0_i32 = arith.constant 0 : i32
    %c0_i32_0 = arith.constant 0 : i32
    %c0_i32_1 = arith.constant 0 : i32
    return %c0_i32, %c0_i32_0 : i32, i32
  }
  func.func @transform_5(%arg0: i32) -> (i32, i32) {
    %c0_i32 = arith.constant 0 : i32
    %c0_i32_0 = arith.constant 0 : i32
    return %arg0, %c0_i32 : i32, i32
  }
}

</mosaic_0001>

<bundles_post_ra>
// kernel: roberta_classification_head.1
= control target key start
LH: loop header
LB: loop body
LE: loop exit
PB: predicated region body
PF: predicated region fallthrough
CT: control target
= control target key end

     0   :  { %s684_s18 = smov 0   ;;  %s823_s0 = inlined_call_operand.vmem [shape: f32[16,1024], index: 0, kind: input, shape index: {}]   ;;  %s824_s1 = inlined_call_operand.vmem [shape: f32[128,128], index: 1, kind: input, shape index: {}]   ;;  %s825_s2 = inlined_call_operand.vmem [shape: f32[1,128], index: 2, kind: input, shape index: {}]   ;;  %s826_s3 = inlined_call_operand.vmem [shape: f32[128,128], index: 3, kind: input, shape index: {}]   ;;  %s827_s4 = inlined_call_operand.vmem [shape: f32[1,128], index: 4, kind: input, shape index: {}]   ;;  %s828_s5 = inlined_call_operand.vmem [shape: f32[16,128], index: 5, kind: output, shape index: {}]  }
   0x1 LB: > { %s465_s19 = sadd.s32 4294967295, %s649_s18   ;;  %p469_p0 = scmp.ge.s32.totalorder %s649_s18, 1  ;;  %s649_s18 = sphi %s684_s18, %s15_s18  }
   0x2   : > { %p187_p1 = scmp.lt.s32.totalorder %s649_s18, 3 }
   0x4   : > { %p188_p2 = pnand %p469_p0, %p187_p1 }
   0x5   : > { %v224_v0 = vld [vmem:[%s824_s1] sm:$0xff] (!%p188_p2)  ;;  %v225_v1 = vld [vmem:[%s824_s1 + $0x8] sm:$0xff] (!%p188_p2)  ;;  %v651_v2 = vmov (!%p188_p2), 0.0|0.0   ;;  %vm652_vm0 = vmmov (!%p188_p2), 0   ;;  %v653_v4 = vmov (!%p188_p2), 0.0   ;;  %v226_v5 = vld [vmem:[%s824_s1 + $0x10] sm:$0xff] (!%p188_p2) }
   0x6   : > { %191 = sbr.rel (%p188_p2) target bundleno = 511 (0x1ff), region = 40  ;;  %582 = vmatprep.subr.bf16.mxu0 (!%p188_p2), %v651_v2  ;;  %v583_v3 = vpack.c.bf16 (!%p188_p2), %v225_v1, %v224_v0  ;;  %544 = vmatprep.mubr.msk.f32.mxu0 (!%p188_p2), %vm652_vm0, %v653_v4  ;;  %v227_v6 = vld [vmem:[%s824_s1 + $0x18] sm:$0xff] (!%p188_p2)  ;;  %v318_v7 = vld [vmem:[%s826_s3] sm:$0xff] (!%p188_p2)  ;;  %v319_v8 = vld [vmem:[%s826_s3 + $0x8] sm:$0xff] (!%p188_p2)  ;;  %p214_p3 = scmp.lt.s32.totalorder (!%p188_p2), %s465_s19, 1 }
   0x7   : > { %606 = vmatprep.subr.bf16.mxu1 (!%p188_p2), %v651_v2  ;;  %579 = vmatprep.mubr.msk.f32.mxu1 (!%p188_p2), %vm652_vm0, %v653_v4  ;;  %v607_v9 = vpack.c.bf16 (!%p188_p2), %v319_v8, %v318_v7  ;;  %v586_v10 = vpack.c.bf16 (!%p188_p2), %v227_v6, %v226_v5  ;;  %v320_v11 = vld [vmem:[%s826_s3 + $0x10] sm:$0xff] (!%p188_p2)  ;;  %v321_v12 = vld [vmem:[%s826_s3 + $0x18] sm:$0xff] (!%p188_p2)  ;;  %v228_v13 = vld [vmem:[%s824_s1 + $0x20] sm:$0xff] (!%p188_p2) }
   0x8   : > { %584 = vmatpush3.bf16.xpose.msra.mxu0 (!%p188_p2), %v583_v3  ;;  %v229_v14 = vld [vmem:[%s824_s1 + $0x28] sm:$0xff] (!%p188_p2)  ;;  %v610_v15 = vpack.c.bf16 (!%p188_p2), %v321_v12, %v320_v11  ;;  %v322_v17 = vld [vmem:[%s826_s3 + $0x20] sm:$0xff] (!%p188_p2)  ;;  %v230_v19 = vld [vmem:[%s824_s1 + $0x30] sm:$0xff] (!%p188_p2) }
   0x9   : > { %585 = vmatprep.subr.bf16.mxu0 (!%p188_p2), %v651_v2  ;;  %608 = vmatpush3.bf16.xpose.msra.mxu1 (!%p188_p2), %v607_v9  ;;  %v589_v16 = vpack.c.bf16 (!%p188_p2), %v229_v14, %v228_v13  ;;  %v323_v18 = vld [vmem:[%s826_s3 + $0x28] sm:$0xff] (!%p188_p2)  ;;  %v231_v20 = vld [vmem:[%s824_s1 + $0x38] sm:$0xff] (!%p188_p2)  ;;  %v324_v23 = vld [vmem:[%s826_s3 + $0x30] sm:$0xff] (!%p188_p2) }
   0xa   : > { %609 = vmatprep.subr.bf16.mxu1 (!%p188_p2), %v651_v2  ;;  %v613_v21 = vpack.c.bf16 (!%p188_p2), %v323_v18, %v322_v17  ;;  %v592_v22 = vpack.c.bf16 (!%p188_p2), %v231_v20, %v230_v19  ;;  %v325_v24 = vld [vmem:[%s826_s3 + $0x38] sm:$0xff] (!%p188_p2)  ;;  %v232_v25 = vld [vmem:[%s824_s1 + $0x40] sm:$0xff] (!%p188_p2)  ;;  %v233_v26 = vld [vmem:[%s824_s1 + $0x48] sm:$0xff] (!%p188_p2) }
   0xb   : > { %v616_v27 = vpack.c.bf16 (!%p188_p2), %v325_v24, %v324_v23  ;;  %v595_v28 = vpack.c.bf16 (!%p188_p2), %v233_v26, %v232_v25  ;;  %v326_v29 = vld [vmem:[%s826_s3 + $0x40] sm:$0xff] (!%p188_p2)  ;;  %v327_v30 = vld [vmem:[%s826_s3 + $0x48] sm:$0xff] (!%p188_p2)  ;;  %v234_v31 = vld [vmem:[%s824_s1 + $0x50] sm:$0xff] (!%p188_p2) }
   0xc   : > { %v235_v32 = vld [vmem:[%s824_s1 + $0x58] sm:$0xff] (!%p188_p2)  ;;  %v619_v33 = vpack.c.bf16 (!%p188_p2), %v327_v30, %v326_v29  ;;  %v328_v35 = vld [vmem:[%s826_s3 + $0x50] sm:$0xff] (!%p188_p2)  ;;  %v236_v37 = vld [vmem:[%s824_s1 + $0x60] sm:$0xff] (!%p188_p2) }
   0xd   : > { %v598_v34 = vpack.c.bf16 %v235_v32, %v234_v31  ;;  %v329_v36 = vld [vmem:[%s826_s3 + $0x58] sm:$0xff]  ;;  %v237_v38 = vld [vmem:[%s824_s1 + $0x68] sm:$0xff]  ;;  %v330_v41 = vld [vmem:[%s826_s3 + $0x60] sm:$0xff]  ;;  %s830_s19 = smov (!%p214_p3, %s465_s19), 1 }
   0xe   : > { %v622_v39 = vpack.c.bf16 %v329_v36, %v328_v35  ;;  %v601_v40 = vpack.c.bf16 %v237_v38, %v236_v37  ;;  %v331_v42 = vld [vmem:[%s826_s3 + $0x68] sm:$0xff]  ;;  %v238_v43 = vld [vmem:[%s824_s1 + $0x70] sm:$0xff]  ;;  %v239_v44 = vld [vmem:[%s824_s1 + $0x78] sm:$0xff]  ;;  %s477_s9 = sshll.u32 %s830_s19, 6  ;;  %s472_s21 = sshll.u32 %s830_s19, 3 }
   0xf   : > { %v625_v45 = vpack.c.bf16 %v331_v42, %v330_v41  ;;  %v604_v46 = vpack.c.bf16 %v239_v44, %v238_v43  ;;  %s218_s12 = scalar_lea.vmem %s823_s0, %s477_s9  ;;  %v332_v48 = vld [vmem:[%s826_s3 + $0x70] sm:$0xff]  ;;  %v333_v49 = vld [vmem:[%s826_s3 + $0x78] sm:$0xff]  ;;  %v473_v51 = vld [vmem:[%s825_s2] ss:$0 sm:$0xff]  ;;  %s222_s26 = scalar_lea.vmem %s828_s5, %s472_s21 }
  0x10   : > { %587 = vmatpush3.bf16.xpose.msra.mxu0 %v586_v10  ;;  %v223_v47 = vld [vmem:[%s218_s12] sm:$0xff]  ;;  %v628_v50 = vpack.c.bf16 %v333_v49, %v332_v48 }
  0x11   : > { %588 = vmatprep.subr.bf16.mxu0 %v651_v2  ;;  %611 = vmatpush3.bf16.xpose.msra.mxu1 %v610_v15  ;;  %v474_v56 = vld [vmem:[%s827_s4] ss:$0 sm:$0xff] }
  0x12   : > { %612 = vmatprep.subr.bf16.mxu1 %v651_v2 }
  0x18   : > { %590 = vmatpush3.bf16.xpose.msra.mxu0 %v589_v16 }
  0x19   : > { %591 = vmatprep.subr.bf16.mxu0 %v651_v2  ;;  %614 = vmatpush3.bf16.xpose.msra.mxu1 %v613_v21 }
  0x1a   : > { %615 = vmatprep.subr.bf16.mxu1 %v651_v2 }
  0x20   : > { %593 = vmatpush3.bf16.xpose.msra.mxu0 %v592_v22 }
  0x21   : > { %594 = vmatprep.subr.bf16.mxu0 %v651_v2  ;;  %617 = vmatpush3.bf16.xpose.msra.mxu1 %v616_v27 }
  0x22   : > { %618 = vmatprep.subr.bf16.mxu1 %v651_v2 }
  0x28   : > { %596 = vmatpush3.bf16.xpose.msra.mxu0 %v595_v28 }
  0x29   : > { %597 = vmatprep.subr.bf16.mxu0 %v651_v2  ;;  %620 = vmatpush3.bf16.xpose.msra.mxu1 %v619_v33 }
  0x2a   : > { %621 = vmatprep.subr.bf16.mxu1 %v651_v2 }
  0x30   : > { %599 = vmatpush3.bf16.xpose.msra.mxu0 %v598_v34 }
  0x31   : > { %600 = vmatprep.subr.bf16.mxu0 %v651_v2  ;;  %623 = vmatpush3.bf16.xpose.msra.mxu1 %v622_v39 }
  0x32   : > { %624 = vmatprep.subr.bf16.mxu1 %v651_v2 }
  0x38   : > { %602 = vmatpush3.bf16.xpose.msra.mxu0 %v601_v40 }
  0x39   : > { %603 = vmatprep.subr.bf16.mxu0 %v651_v2  ;;  %626 = vmatpush3.bf16.xpose.msra.mxu1 %v625_v45 }
  0x3a   : > { %627 = vmatprep.subr.bf16.mxu1 %v651_v2 }
  0x40   : > { %605 = vmatpush3.bf16.xpose.msra.mxu0 %v604_v46 }
  0x41   : > { %629 = vmatpush3.bf16.xpose.msra.mxu1 %v628_v50 }
  0x47   : > { %545 = vmatmul.mubr.f32.vlgmr.msra.gmra.mrb[0].mxu0 %v223_v47 }
 0x11a   : > { %v313_v52 = vpop.f32.mrb[0].mxu0 }
 0x11b   : > { %v314_v53 = vadd.f32 %v473_v51, %v313_v52  ;;  %v546_v54 = vpop.f32.mrb[1].mxu0 }
 0x11d   : > { %641 = vtanh.f32 %v314_v53 }
 0x127   : > { %v642_v55 = vpop.eup %641 }
 0x128   : > { %580 = vmatmul.mubr.f32.vlgmr.msra.gmra.mrb[0].mxu1 %v642_v55 }
 0x1fb   : > { %v407_v57 = vpop.f32.mrb[0].mxu1 }
 0x1fc   : > { %v408_v58 = vadd.f32 %v474_v56, %v407_v57  ;;  %v581_v59 = vpop.f32.mrb[1].mxu1 }
 0x1fe   : > { %411 = vst [vmem:[%s222_s26] sm:$0xff] %v408_v58 }
 0x1ff PF: > { %s15_s18 = sadd.s32 1, %s649_s18  }
 0x200   : > { %p12_p4 = scmp.ge.s32.totalorder %s15_s18, 4  }
 0x202   :  { %14 = sbr.rel (!%p12_p4) target bundleno = 1 (0x1), region = 70 }

</bundles_post_ra>
